<compile_context>
chip_gen: v7x
topology: tpu7x:2x2x1
jax: 0.10.0
libtpu: 0.0.40
codegen_flags: <defaults>
</compile_context>

<pallas_src>
import math

import jax
import jax.numpy as jnp
from jax.experimental import pallas as pl
from jax.experimental.pallas import tpu as pltpu


def _admnn_kernel(x_ref, wpat_ref, s_ref, b_ref, o_ref):
    """One row-block of packed batch rows.

    x_ref    : (tr, W)  f32   W = lane_pack * D packed lanes (contiguous DMA)
    wpat_ref : (1, W)   f32   w repeated per packed slot (sublane broadcast)
    s_ref    : (W, P)   bf16  0/1 block-diagonal summation matrix (exact)
    b_ref    : (tr, P)  f32   bias, one lane per packed batch row
    o_ref    : (tr, P)  f32   output, one lane per packed batch row
    """
    # Exact-ish f32 products on the VPU.
    t = x_ref[...] * wpat_ref[...]                      # (tr, W)
    # Split-precision: t_hi + t_lo reproduces t to ~2^-17 relative, and the
    # summation matrix is exact in bf16, so two bf16 MXU matmuls give
    # near-f32 accuracy regardless of the f32-matmul lowering policy.
    t_hi = t.astype(jnp.bfloat16)
    t_lo = (t - t_hi.astype(jnp.float32)).astype(jnp.bfloat16)
    acc = jnp.dot(t_hi, s_ref[...], preferred_element_type=jnp.float32)
    acc = acc + jnp.dot(t_lo, s_ref[...], preferred_element_type=jnp.float32)
    o_ref[...] = ((acc + b_ref[...]) * 0.01).astype(o_ref.dtype)


def admnn_forward(x, w, b, *, block_rows=2048, x_buffers=2, small_batch_jnp=0):
    """AdmNN.forward: (x @ w + b) / 100 for x:(B,D), w:(D,1), b:(B,1)."""
    B, D = x.shape
    assert w.shape == (D, 1), w.shape
    assert b.shape == (B, 1), b.shape
    assert block_rows % 8 == 0

    if B < small_batch_jnp:
        # Launch-overhead-bound regime: cheaper to let XLA fuse the three ops.
        return (x @ w + b) * 0.01

    # Pack `lane_pack` batch rows per lane-row so the packed width is a
    # multiple of 128 (64 rows * 6 dims = 384 lanes for the default D=6).
    lane_pack = 128 // math.gcd(128, D)
    W = lane_pack * D
    R = max(pl.cdiv(B, lane_pack), 8)   # >=8 sublanes per block
    Bp = R * lane_pack

    if Bp != B:
        pad = Bp - B
        x = jnp.pad(x, ((0, pad), (0, 0)))
        b = jnp.pad(b, ((0, pad), (0, 0)))

    # Contiguous row-major reshapes: bitcast-level, no extra HBM pass.
    xp = x.reshape(R, W)
    bp = b.reshape(R, lane_pack)

    # Tiny resident operands derived from w.
    w_flat = w.reshape(-1).astype(jnp.float32)
    wpat = jnp.tile(w_flat, lane_pack).reshape(1, W)            # wpat[0,i]=w[i%D]
    slot = jnp.arange(W, dtype=jnp.int32) // D
    summ = (slot[:, None] == jnp.arange(lane_pack, dtype=jnp.int32)[None, :]
            ).astype(jnp.bfloat16)                              # (W, lane_pack)

    tr = R if R <= block_rows else block_rows
    grid = (pl.cdiv(R, tr),)

    x_spec_kwargs = {}
    if x_buffers != 2:
        # Optional deeper pipelining for v7x if DMA is still exposed.
        x_spec_kwargs["pipeline_mode"] = pl.Buffered(x_buffers)

    out_p = pl.pallas_call(
        _admnn_kernel,
        out_shape=jax.ShapeDtypeStruct((R, lane_pack), jnp.float32),
        grid_spec=pltpu.PrefetchScalarGridSpec(
            num_scalar_prefetch=0,
            grid=grid,
            in_specs=[
                pl.BlockSpec((tr, W), lambda i: (i, 0), **x_spec_kwargs),
                pl.BlockSpec((1, W), lambda i: (0, 0)),            # resident
                pl.BlockSpec((W, lane_pack), lambda i: (0, 0)),    # resident
                pl.BlockSpec((tr, lane_pack), lambda i: (i, 0)),
            ],
            out_specs=pl.BlockSpec((tr, lane_pack), lambda i: (i, 0)),
        ),
        compiler_params=pltpu.CompilerParams(
            dimension_semantics=("parallel",)),
    )(xp, wpat, summ, bp)

    out = out_p.reshape(Bp, 1)
    return out if Bp == B else out[:B]


if __name__ == "__main__":
    num_dims = 6
    batch_size = 20
    sig = 0.7

    key = jax.random.PRNGKey(0)
    kw, kx, kb, kx2, kb2, kx3, kb3 = jax.random.split(key, 7)

    # Deterministic synthetic parameters matching the module's __init__ shapes.
    w = jax.random.normal(kw, (num_dims, 1), dtype=jnp.float32)

    def ref_fn(x, b):
        y = jnp.dot(x, w, precision=jax.lax.Precision.HIGHEST) + b
        return y / 100.0

    # Module-default shapes (B=20): single-block path.
    x = jax.random.normal(kx, (batch_size, num_dims), dtype=jnp.float32)
    b = sig * jax.random.normal(kb, (batch_size, 1), dtype=jnp.float32)
    out = jax.block_until_ready(admnn_forward(x, w, b))
    assert out.shape == (batch_size, 1)
    assert jnp.allclose(out, ref_fn(x, b), atol=1e-5, rtol=1e-5)

    # Large batch divisible by the 64-row packing: tiled HBM-roofline path
    # (4 grid steps of ~3 MiB of x each, "parallel" over row-blocks).
    B2 = 1 << 19
    x2 = jax.random.normal(kx2, (B2, num_dims), dtype=jnp.float32)
    b2 = sig * jax.random.normal(kb2, (B2, 1), dtype=jnp.float32)
    out2 = jax.block_until_ready(admnn_forward(x2, w, b2))
    assert out2.shape == (B2, 1)
    assert jnp.allclose(out2, ref_fn(x2, b2), atol=1e-5, rtol=1e-5)

    # Ragged batch: exercises the wrapper pad and the cdiv-grid masked tail.
    B3 = 600
    x3 = jax.random.normal(kx3, (B3, num_dims), dtype=jnp.float32)
    b3 = sig * jax.random.normal(kb3, (B3, 1), dtype=jnp.float32)
    out3 = jax.block_until_ready(admnn_forward(x3, w, b3, block_rows=8))
    assert out3.shape == (B3, 1)
    assert jnp.allclose(out3, ref_fn(x3, b3), atol=1e-5, rtol=1e-5)

    print("KERNEL_OK")
</pallas_src>

<mosaic_0001>
module attributes {stable_mosaic.version = 11 : i64} {
  func.func @_admnn_kernel(%arg0: i32, %arg1: memref<8x384xf32, #tpu.memory_space<vmem>>, %arg2: memref<1x384xf32, #tpu.memory_space<vmem>>, %arg3: memref<384x64xbf16, #tpu.memory_space<vmem>>, %arg4: memref<8x64xf32, #tpu.memory_space<vmem>>, %arg5: memref<8x64xf32, #tpu.memory_space<vmem>>) attributes {dimension_semantics = [#tpu.dimension_semantics<parallel>], iteration_bounds = array<i64: 1>, scalar_prefetch = 0 : i64, scratch_operands = 0 : i64, tpu.core_type = #tpu.core_type<tc>, window_params = [{transform_indices = @transform_0, window_bounds = array<i64: 8, 384>}, {pipeline_mode = #tpu.pipeline_mode<synchronous>, transform_indices = @transform_1, window_bounds = array<i64: 1, 384>}, {pipeline_mode = #tpu.pipeline_mode<synchronous>, transform_indices = @transform_2, window_bounds = array<i64: 384, 64>}, {transform_indices = @transform_3, window_bounds = array<i64: 8, 64>}, {transform_indices = @transform_4, window_bounds = array<i64: 8, 64>}]} {
    %c0 = arith.constant 0 : index
    %c0_0 = arith.constant 0 : index
    %0 = vector.load %arg1[%c0, %c0_0] : memref<8x384xf32, #tpu.memory_space<vmem>>, vector<8x384xf32>
    %c0_1 = arith.constant 0 : index
    %c0_2 = arith.constant 0 : index
    %1 = vector.load %arg2[%c0_1, %c0_2] : memref<1x384xf32, #tpu.memory_space<vmem>>, vector<1x384xf32>
    %2 = vector.broadcast %1 : vector<1x384xf32> to vector<8x384xf32>
    %3 = arith.mulf %0, %2 : vector<8x384xf32>
    %4 = arith.truncf %3 : vector<8x384xf32> to vector<8x384xbf16>
    %5 = arith.extf %4 : vector<8x384xbf16> to vector<8x384xf32>
    %6 = arith.subf %3, %5 : vector<8x384xf32>
    %7 = arith.truncf %6 : vector<8x384xf32> to vector<8x384xbf16>
    %c0_3 = arith.constant 0 : index
    %c0_4 = arith.constant 0 : index
    %8 = vector.load %arg3[%c0_3, %c0_4] : memref<384x64xbf16, #tpu.memory_space<vmem>>, vector<384x64xbf16>
    %cst = arith.constant dense<0.000000e+00> : vector<8x64xf32>
    %9 = tpu.matmul %4, %8, %cst {dimension_numbers = #tpu.dot_dimension_numbers<[1], [0], [0], [1], [0, 0, 1, 1], [], []>} : vector<8x384xbf16>, vector<384x64xbf16>, vector<8x64xf32> -> vector<8x64xf32>
    %c0_5 = arith.constant 0 : index
    %c0_6 = arith.constant 0 : index
    %10 = vector.load %arg3[%c0_5, %c0_6] : memref<384x64xbf16, #tpu.memory_space<vmem>>, vector<384x64xbf16>
    %cst_7 = arith.constant dense<0.000000e+00> : vector<8x64xf32>
    %11 = tpu.matmul %7, %10, %cst_7 {dimension_numbers = #tpu.dot_dimension_numbers<[1], [0], [0], [1], [0, 0, 1, 1], [], []>} : vector<8x384xbf16>, vector<384x64xbf16>, vector<8x64xf32> -> vector<8x64xf32>
    %12 = arith.addf %9, %11 : vector<8x64xf32>
    %c0_8 = arith.constant 0 : index
    %c0_9 = arith.constant 0 : index
    %13 = vector.load %arg4[%c0_8, %c0_9] : memref<8x64xf32, #tpu.memory_space<vmem>>, vector<8x64xf32>
    %14 = arith.addf %12, %13 : vector<8x64xf32>
    %cst_10 = arith.constant 0.00999999977 : f32
    %15 = vector.broadcast %cst_10 : f32 to vector<8x64xf32>
    %16 = arith.mulf %14, %15 : vector<8x64xf32>
    %c0_11 = arith.constant 0 : index
    %c0_12 = arith.constant 0 : index
    %17 = vector.load %arg5[%c0_11, %c0_12] : memref<8x64xf32, #tpu.memory_space<vmem>>, vector<8x64xf32>
    tpu.vector_store %arg5[%c0_11, %c0_12], %16 {strides = array<i32>} : memref<8x64xf32, #tpu.memory_space<vmem>>, vector<8x64xf32>,
    return
  }
  func.func @transform_0(%arg0: i32) -> (i32, i32) {
    %c0_i32 = arith.constant 0 : i32
    %c0_i32_0 = arith.constant 0 : i32
    return %arg0, %c0_i32 : i32, i32
  }
  func.func @transform_1(%arg0: i32) -> (i32, i32) {
    %c0_i32 = arith.constant 0 : i32
    %c0_i32_0 = arith.constant 0 : i32
    %c0_i32_1 = arith.constant 0 : i32
    return %c0_i32, %c0_i32_0 : i32, i32
  }
  func.func @transform_2(%arg0: i32) -> (i32, i32) {
    %c0_i32 = arith.constant 0 : i32
    %c0_i32_0 = arith.constant 0 : i32
    %c0_i32_1 = arith.constant 0 : i32
    return %c0_i32, %c0_i32_0 : i32, i32
  }
  func.func @transform_3(%arg0: i32) -> (i32, i32) {
    %c0_i32 = arith.constant 0 : i32
    %c0_i32_0 = arith.constant 0 : i32
    return %arg0, %c0_i32 : i32, i32
  }
  func.func @transform_4(%arg0: i32) -> (i32, i32) {
    %c0_i32 = arith.constant 0 : i32
    %c0_i32_0 = arith.constant 0 : i32
    return %arg0, %c0_i32 : i32, i32
  }
}

</mosaic_0001>

<bundles_post_ra>
// kernel: tpu_custom_call.1
= control target key start
LH: loop header
LB: loop body
LE: loop exit
PB: predicated region body
PF: predicated region fallthrough
CT: control target
= control target key end

     0   :  { %v602_v2 = vmov 0.0   ;;  %vm603_vm0 = vmmov 0   ;;  %v24_v12 = vlaneseq  ;;  %s837_s0 = inlined_call_operand.vmem [shape: f32[8,384], index: 0, kind: input, shape index: {}]   ;;  %s838_s1 = inlined_call_operand.vmem [shape: f32[1,384], index: 1, kind: input, shape index: {}]   ;;  %s839_s2 = inlined_call_operand.vmem [shape: bf16[384,64], index: 2, kind: input, shape index: {}]   ;;  %s840_s3 = inlined_call_operand.vmem [shape: f32[8,64], index: 3, kind: input, shape index: {}]   ;;  %s841_s4 = inlined_call_operand.hbm [shape: f32[8,64], index: 4, kind: output, shape index: {}]  }
   0x1   :  { %v633_v0 = vld [vmem:[%s839_s2 + $0x40] sm:$0xff]   ;;  %511 = vmatprep.subr.bf16.mxu1 %v602_v2  ;;  %527 = vmatprep.mubr.msk.bf16.mxu1 %vm603_vm0, %v602_v2  ;;  %v653_v4 = vld [vmem:[%s839_s2 + $0x48] sm:$0xff]   ;;  %v671_v7 = vld [vmem:[%s839_s2 + $0x50] sm:$0xff]  }
   0x2   :  { %v638_v1 = vld [vmem:[%s839_s2] sm:$0xff]   ;;  %449 = vmatprep.subr.bf16.mxu0 %v633_v0  ;;  %v659_v5 = vld [vmem:[%s839_s2 + $0x8] sm:$0xff]   ;;  %v677_v8 = vld [vmem:[%s839_s2 + $0x10] sm:$0xff]   ;;  %v25_v16 = vshrl.u32 %v24_v12, 7 }
   0x3   :  { %v645_v3 = vld [vmem:[%s839_s2 + $0x80] sm:$0xff]   ;;  %450 = vmatpush3.bf16.msra.mxu0 %v638_v1  ;;  %v666_v6 = vld [vmem:[%s839_s2 + $0x88] sm:$0xff]   ;;  %v684_v9 = vld [vmem:[%s839_s2 + $0x90] sm:$0xff]  }
   0x4   :  { %512 = vmatpush3.bf16.msra.mxu1 %v645_v3  ;;  %451 = vmatprep.subr.bf16.mxu0 %v653_v4  ;;  %v690_v10 = vld [vmem:[%s839_s2 + $0x58] sm:$0xff]   ;;  %v708_v14 = vld [vmem:[%s839_s2 + $0x60] sm:$0xff]   ;;  %v727_v18 = vld [vmem:[%s839_s2 + $0x68] sm:$0xff]   ;;  %v30_v20 = vsub.s32 1, %v25_v16  ;;  %v26_v22 = vsub.s32 0, %v25_v16  ;;  %v34_v24 = vsub.s32 2, %v25_v16 }
   0x5   :  { %513 = vmatprep.subr.bf16.mxu1 %v602_v2  ;;  %v695_v11 = vld [vmem:[%s839_s2 + $0x18] sm:$0xff]   ;;  %v714_v15 = vld [vmem:[%s839_s2 + $0x20] sm:$0xff]   ;;  %v733_v19 = vld [vmem:[%s839_s2 + $0x28] sm:$0xff]  }
   0x6   :  { %v701_v13 = vld [vmem:[%s839_s2 + $0x98] sm:$0xff]   ;;  %v720_v17 = vld [vmem:[%s839_s2 + $0xa0] sm:$0xff]   ;;  %v739_v21 = vld [vmem:[%s839_s2 + $0xa8] sm:$0xff]  }
   0x7   :  { %452 = vmatpush3.bf16.msra.mxu0 %v659_v5  ;;  %v746_v23 = vld [vmem:[%s839_s2 + $0x70] sm:$0xff]   ;;  %v20_v27 = vld [vmem:[%s837_s0 + $0x8] sm:$0xff]  ;;  %v22_v28 = vld [vmem:[%s838_s1] sm:$0x7] }
   0x8   :  { %514 = vmatpush3.bf16.msra.mxu1 %v666_v6  ;;  %453 = vmatprep.subr.bf16.mxu0 %v671_v7  ;;  %v752_v25 = vld [vmem:[%s839_s2 + $0x30] sm:$0xff]   ;;  %v771_v29 = vld [vmem:[%s839_s2 + $0x78] sm:$0xff]   ;;  %v31_v30 = vrot.slane %v22_v28, %v30_v20  ;;  %v19_v31 = vld [vmem:[%s837_s0] sm:$0xff]  ;;  %v27_v32 = vrot.slane %v22_v28, %v26_v22  ;;  %v35_v33 = vrot.slane %v22_v28, %v34_v24 }
   0x9   :  { %515 = vmatprep.subr.bf16.mxu1 %v602_v2  ;;  %v757_v26 = vld [vmem:[%s839_s2 + $0xb0] sm:$0xff]  }
   0xa   :  { %v21_v34 = vld [vmem:[%s837_s0 + $0x10] sm:$0xff] }
   0xb   :  { %454 = vmatpush3.bf16.msra.mxu0 %v677_v8 }
   0xc   :  { %516 = vmatpush3.bf16.msra.mxu1 %v684_v9  ;;  %455 = vmatprep.subr.bf16.mxu0 %v690_v10 }
   0xd   :  { %517 = vmatprep.subr.bf16.mxu1 %v602_v2 }
   0xf   :  { %456 = vmatpush3.bf16.msra.mxu0 %v695_v11 }
  0x10   :  { %518 = vmatpush3.bf16.msra.mxu1 %v701_v13  ;;  %457 = vmatprep.subr.bf16.mxu0 %v708_v14 }
  0x11   :  { %519 = vmatprep.subr.bf16.mxu1 %v602_v2 }
  0x13   :  { %458 = vmatpush3.bf16.msra.mxu0 %v714_v15 }
  0x14   :  { %520 = vmatpush3.bf16.msra.mxu1 %v720_v17  ;;  %459 = vmatprep.subr.bf16.mxu0 %v727_v18 }
  0x15   :  { %521 = vmatprep.subr.bf16.mxu1 %v602_v2 }
  0x17   :  { %460 = vmatpush3.bf16.msra.mxu0 %v733_v19 }
  0x18   :  { %522 = vmatpush3.bf16.msra.mxu1 %v739_v21  ;;  %461 = vmatprep.subr.bf16.mxu0 %v746_v23 }
  0x19   :  { %523 = vmatprep.subr.bf16.mxu1 %v602_v2 }
  0x1a   :  { %9 = vsyncpa [#allocation3], 0  ;;  %v40_v35 = vmul.f32 %v31_v30, %v20_v27  ;;  %v39_v36 = vmul.f32 %v27_v32, %v19_v31  ;;  %v41_v37 = vmul.f32 %v35_v33, %v21_v34  ;;  %v576_v38 = vld [vmem:[%s839_s2 + $0x38] sm:$0xff]   ;;  %s604_s18 = smov [#allocation2]   ;;  %vm409_vm1 = vcmask 523264  }
  0x1b   :  { %462 = vmatpush3.bf16.msra.mxu0 %v752_v25  ;;  %v577_v40 = vld [vmem:[%s839_s2 + $0xb8] sm:$0xff]   ;;  %s417_s19 = sshll.u32 %s604_s18, 4  ;;  %s418_s19 = int_to_ptr.vmem [resolvable:$true] %s417_s19 }
  0x1c   :  { %524 = vmatpush3.bf16.msra.mxu1 %v757_v26  ;;  %463 = vmatprep.subr.bf16.mxu0 %v771_v29  ;;  %v43_v39 = vpack.c.bf16 %v40_v35, %v40_v35  ;;  %v42_v41 = vpack.c.bf16 %v39_v36, %v39_v36  ;;  %v44_v42 = vpack.c.bf16 %v41_v37, %v41_v37  ;;  %s578_s20 = scalar_lea.vmem %s418_s19, 128  ;;  %p583_p1 = scmp.lt.s32.totalorder %s418_s19, %s418_s19 }
  0x1d   :  { %525 = vmatprep.subr.bf16.mxu1 %v602_v2  ;;  %p579_p0 = scmp.ne.s32.totalorder %s418_s19, %s578_s20  ;;  %p584_p2 = scmp.lt.s32.totalorder %s578_s20, %s578_s20 }
  0x1e   :  { %v46_v43 = vunpack.c.l.bf16 %v43_v39  ;;  %v45_v44 = vunpack.c.l.bf16 %v42_v41  ;;  %v47_v45 = vunpack.c.l.bf16 %v44_v42 }
  0x1f   :  { %464 = vmatpush3.bf16.msra.mxu0 %v576_v38  ;;  %p585_p3 = por %p584_p2, %p583_p1 }
  0x20   :  { %v49_v46 = vsub.f32 %v40_v35, %v46_v43  ;;  %526 = vmatpush3.bf16.msra.mxu1 %v577_v40  ;;  %v48_v47 = vsub.f32 %v39_v36, %v45_v44  ;;  %480 = vmatprep.subr.bf16.mxu0 %v633_v0  ;;  %v50_v48 = vsub.f32 %v41_v37, %v47_v45 }
  0x21   :  { %531 = vmatprep.subr.bf16.mxu1 %v602_v2  ;;  %p586_p4 = pnand %p585_p3, %p579_p0 }
  0x22   :  { %v52_v49 = vpack.c.bf16 %v49_v46, %v49_v46  ;;  %v51_v50 = vpack.c.bf16 %v48_v47, %v48_v47  ;;  %v53_v51 = vpack.c.bf16 %v50_v48, %v50_v48 }
  0x24   :  { %278 = vmatprep.mubr.bf16.mxu0 %v52_v49  ;;  %528 = vmatmul.mubr.bf16.vlgmr.msra.gmra.mrb[0].mxu1 %v53_v51 }
  0x25   :  { %279 = vmatmul.mubr.bf16.vlgmr.msra.gmra.mrb[0].mxu0 %v51_v50  ;;  %532 = vmatpush3.bf16.msra.mxu1 %v645_v3 }
  0x26   :  { %481 = vmatpush3.bf16.msra.mxu0 %v638_v1  ;;  %533 = vmatprep.subr.bf16.mxu1 %v602_v2 }
  0x27   :  { %482 = vmatprep.subr.bf16.mxu0 %v653_v4  ;;  %358 = vmatprep.mubr.bf16.mxu0 %v43_v39 }
  0x28   :  { %547 = vmatprep.mubr.msk.bf16.mxu1 %vm603_vm0, %v602_v2 }
  0x29   :  { %534 = vmatpush3.bf16.msra.mxu1 %v666_v6 }
  0x2a   :  { %483 = vmatpush3.bf16.msra.mxu0 %v659_v5  ;;  %535 = vmatprep.subr.bf16.mxu1 %v602_v2 }
  0x2b   :  { %484 = vmatprep.subr.bf16.mxu0 %v671_v7 }
  0x2d   :  { %536 = vmatpush3.bf16.msra.mxu1 %v684_v9 }
  0x2e   :  { %485 = vmatpush3.bf16.msra.mxu0 %v677_v8  ;;  %537 = vmatprep.subr.bf16.mxu1 %v602_v2  ;;  %v406_v8 = vld [vmem:[%s840_s3] sm:$0xff] }
  0x2f   :  { %486 = vmatprep.subr.bf16.mxu0 %v690_v10 }
  0x31   :  { %538 = vmatpush3.bf16.msra.mxu1 %v701_v13 }
  0x32   :  { %487 = vmatpush3.bf16.msra.mxu0 %v695_v11  ;;  %539 = vmatprep.subr.bf16.mxu1 %v602_v2 }
  0x33   :  { %488 = vmatprep.subr.bf16.mxu0 %v708_v14 }
  0x35   :  { %540 = vmatpush3.bf16.msra.mxu1 %v720_v17 }
  0x36   :  { %489 = vmatpush3.bf16.msra.mxu0 %v714_v15  ;;  %541 = vmatprep.subr.bf16.mxu1 %v602_v2 }
  0x37   :  { %490 = vmatprep.subr.bf16.mxu0 %v727_v18 }
  0x39   :  { %542 = vmatpush3.bf16.msra.mxu1 %v739_v21 }
  0x3a   :  { %491 = vmatpush3.bf16.msra.mxu0 %v733_v19  ;;  %543 = vmatprep.subr.bf16.mxu1 %v602_v2 }
  0x3b   :  { %492 = vmatprep.subr.bf16.mxu0 %v746_v23 }
  0x3d   :  { %544 = vmatpush3.bf16.msra.mxu1 %v757_v26 }
  0x3e   :  { %493 = vmatpush3.bf16.msra.mxu0 %v752_v25  ;;  %545 = vmatprep.subr.bf16.mxu1 %v602_v2 }
  0x3f   :  { %494 = vmatprep.subr.bf16.mxu0 %v771_v29 }
  0x41   :  { %546 = vmatpush3.bf16.msra.mxu1 %v577_v40 }
  0x42   :  { %495 = vmatpush3.bf16.msra.mxu0 %v576_v38 }
  0x44   :  { %548 = vmatmul.mubr.bf16.vlgmr.msra.gmra.mrb[4].mxu1 %v44_v42 }
  0x45   :  { %359 = vmatmul.mubr.bf16.vlgmr.msra.gmra.mrb[4].mxu0 %v42_v41 }
  0xf7   :  { %v320_v52 = vpop.f32.mrb[0].mxu1 }
  0xf8   :  { %v465_v53 = vpop.f32.mrb[0].mxu0  ;;  %v529_v54 = vpop.f32.mrb[1].mxu1 }
  0xf9   :  { %v466_v55 = vpop.f32.mrb[1].mxu0  ;;  %v323_v56 = vpop.f32.mrb[2].mxu1 }
  0xfa   :  { %v467_v57 = vadd.f32 %v466_v55, %v465_v53  ;;  %v468_v58 = vpop.f32.mrb[2].mxu0  ;;  %v530_v59 = vpop.f32.mrb[3].mxu1 }
  0xfb   :  { %v469_v60 = vpop.f32.mrb[3].mxu0 }
  0xfc   :  { %v321_v61 = vadd.f32 %v467_v57, %v320_v52 }
 0x117   :  { %v400_v62 = vpop.f32.mrb[4].mxu1 }
 0x118   :  { %v496_v63 = vpop.f32.mrb[4].mxu0  ;;  %v549_v0 = vpop.f32.mrb[5].mxu1 }
 0x119   :  { %v497_v1 = vpop.f32.mrb[5].mxu0  ;;  %v403_v2 = vpop.f32.mrb[6].mxu1 }
 0x11a   :  { %v498_v3 = vadd.f32 %v497_v1, %v496_v63  ;;  %v499_v4 = vpop.f32.mrb[6].mxu0  ;;  %v550_v5 = vpop.f32.mrb[7].mxu1 }
 0x11b   :  { %v500_v6 = vpop.f32.mrb[7].mxu0 }
 0x11c   :  { %v361_v7 = vadd.f32 %v498_v3, %v321_v61 }
 0x11e   :  { %v401_v9 = vadd.f32 %v400_v62, %v361_v7 }
 0x120   :  { %v407_v10 = vadd.f32 %v406_v8, %v401_v9 }
 0x122   :  { %v408_v11 = vmul.f32 0.01, %v407_v10 }
 0x124   :  { %410 = vst.msk [vmem:[#allocation2] sm:$0xff] %vm409_vm1, %v408_v11 }
 0x125   :  { %589 = shalt.err (!%p586_p4)
}
 0x126   :  { %s590_s23 = scalar_lea.hbm %s841_s4, 128 }
 0x127   :  { %p591_p5 = scmp.ne.s32.totalorder %s841_s4, %s590_s23  ;;  %p594_p6 = scmp.lt.u32.totalorder %s590_s23, %s841_s4 }
 0x129   :  { %p596_p7 = pnand %p594_p6, %p591_p5 }
 0x12b   :  { %599 = shalt.err (!%p596_p7)
}
 0x12c   :  { %420 = dma.vmem_to_hbm [thread:$0]  %s418_s19, 128, %s841_s4, [#allocation3]  }
 0x12d   :  { %600 = dma.done.wait [#allocation3], 128  }
 0x12e   :  { %601 = vsyncadd [#allocation3], 4294967168 }
 0x12f   :  { %424 = vsyncpa [#allocation3], 1 }

</bundles_post_ra>
